<compile_context>
chip_gen: v6e
topology: v6e:2x2x1
jax: 0.10.0
libtpu: 0.0.40
codegen_flags: <defaults>
</compile_context>

<pallas_src>
import functools

import jax
import jax.numpy as jnp
from jax.experimental import pallas as pl
from jax.experimental.pallas import tpu as pltpu

H = 128                 # hidden width of the model
GATHER_THRESHOLD = 96   # above this n_steps, gather gammas in the wrapper instead


def _cdiv(a, b):
    return (a + b - 1) // b


def _round_up(a, m):
    return _cdiv(a, m) * m


def _softplus(x):
    # numerically stable softplus (matches F.softplus): max(x,0) + log1p(exp(-|x|))
    return jnp.maximum(x, 0.0) + jnp.log1p(jnp.exp(-jnp.abs(x)))


def _network_body(x, g1, g2, g3,
                  w1_ref, b1_ref, w2_ref, b2_ref, w3_ref, b3_ref, w4_ref, b4_ref,
                  o_ref, ew_dtype):
    """Shared fused body: three conditional-linear+softplus layers and the output linear."""
    cdt = w1_ref.dtype  # bf16 — MXU-native operand dtype

    def cond_layer(h, w_ref, b_ref, g):
        # f32 accumulation + f32 bias add; gamma-multiply and softplus in ew_dtype
        pre = jnp.dot(h.astype(cdt), w_ref[...],
                      preferred_element_type=jnp.float32) + b_ref[...]
        return _softplus(g.astype(ew_dtype) * pre.astype(ew_dtype))

    h = cond_layer(x, w1_ref, b1_ref, g1)
    h = cond_layer(h, w2_ref, b2_ref, g2)
    h = cond_layer(h, w3_ref, b3_ref, g3)
    out = jnp.dot(h.astype(cdt), w4_ref[...],
                  preferred_element_type=jnp.float32) + b4_ref[...]
    o_ref[...] = out.astype(o_ref.dtype)


def _kernel_onehot_gather(x_ref, y_ref, emb_ref,
                          w1_ref, b1_ref, w2_ref, b2_ref, w3_ref, b3_ref,
                          w4_ref, b4_ref, o_ref, *, ew_dtype):
    """Small n_steps: gather all three gammas with one one-hot matmul on the MXU."""
    n_steps = emb_ref.shape[0]
    tb = x_ref.shape[0]
    steps = jax.lax.broadcasted_iota(jnp.int32, (tb, n_steps), 1)
    onehot = (y_ref[...] == steps).astype(emb_ref.dtype)        # exact 0/1, (TB, n_steps)
    gam = jnp.dot(onehot, emb_ref[...],
                  preferred_element_type=jnp.float32)            # (TB, 3*H)
    _network_body(x_ref[...], gam[:, 0 * H:1 * H], gam[:, 1 * H:2 * H], gam[:, 2 * H:3 * H],
                  w1_ref, b1_ref, w2_ref, b2_ref, w3_ref, b3_ref, w4_ref, b4_ref,
                  o_ref, ew_dtype)


def _kernel_pregathered(x_ref, gam_ref,
                        w1_ref, b1_ref, w2_ref, b2_ref, w3_ref, b3_ref,
                        w4_ref, b4_ref, o_ref, *, ew_dtype):
    """Large n_steps: gammas were gathered in the wrapper and stream in batch-tiled."""
    gam = gam_ref[...]                                           # (TB, 3*H) bf16
    _network_body(x_ref[...], gam[:, 0 * H:1 * H], gam[:, 1 * H:2 * H], gam[:, 2 * H:3 * H],
                  w1_ref, b1_ref, w2_ref, b2_ref, w3_ref, b3_ref, w4_ref, b4_ref,
                  o_ref, ew_dtype)


def _default_elementwise_dtype():
    # bf16 VPU/EUP exist on v6e/v7x; older generations (v5e/v5p/v4) need f32 elementwise.
    try:
        kind = jax.devices()[0].device_kind.lower()
    except Exception:
        return jnp.float32
    if ("v6" in kind) or ("v7" in kind) or ("7x" in kind):
        return jnp.bfloat16
    return jnp.float32


def _choose_batch_tile(b, tb_max):
    """Adaptive tile: minimize tail padding, keep a multiple of 8, and keep >=2 grid
    steps for big batches so v7x's two TensorCores both get work."""
    n = max(1, _cdiv(b, tb_max))
    if n == 1 and b >= 512:
        n = 2
    return _round_up(_cdiv(b, n), 8)


def conditional_model_forward(x, y, params, *, tb_max=2048, elementwise_dtype=None):
    """x: (B, input_size) float32, y: (B,) int32 timestep indices."""
    B, din = x.shape
    ew_dtype = _default_elementwise_dtype() if elementwise_dtype is None else elementwise_dtype
    emb = params["embed_cat"]          # (n_steps, 3*H) f32 master copy
    n_steps = emb.shape[0]

    tb = _choose_batch_tile(B, tb_max)
    b_pad = _round_up(B, tb)
    if b_pad != B:
        x = jnp.pad(x, ((0, b_pad - B), (0, 0)))
        y = jnp.pad(y, (0, b_pad - B))            # pad with step 0 (valid index; rows sliced off)
    y = y.astype(jnp.int32)

    weights = (params["w1"], params["b1"], params["w2"], params["b2"],
               params["w3"], params["b3"], params["w4"], params["b4"])

    resident = lambda a: pl.BlockSpec(a.shape, lambda i: (0, 0))          # stays in VMEM
    batch_tiled = lambda width: pl.BlockSpec((tb, width), lambda i: (i, 0))

    if n_steps <= GATHER_THRESHOLD:
        # In-kernel one-hot gather: no dense (B, 3*H) gamma tensor ever touches HBM.
        kernel = functools.partial(_kernel_onehot_gather, ew_dtype=ew_dtype)
        inputs = (x, y.reshape(b_pad, 1), emb.astype(jnp.bfloat16)) + weights
        in_specs = ([batch_tiled(din), batch_tiled(1), resident(emb)]
                    + [resident(a) for a in weights])
    else:
        # Large step table: the one-hot matmul would dominate MXU work, so gather the
        # gammas in the wrapper and stream them batch-tiled as bf16 (768 B/row of HBM).
        gammas = emb[y].astype(jnp.bfloat16)      # (b_pad, 3*H)
        kernel = functools.partial(_kernel_pregathered, ew_dtype=ew_dtype)
        inputs = (x, gammas) + weights
        in_specs = ([batch_tiled(din), batch_tiled(3 * H)]
                    + [resident(a) for a in weights])

    out = pl.pallas_call(
        kernel,
        out_shape=jax.ShapeDtypeStruct((b_pad, din), x.dtype),
        grid_spec=pltpu.PrefetchScalarGridSpec(
            num_scalar_prefetch=0,
            grid=(b_pad // tb,),
            in_specs=in_specs,
            out_specs=batch_tiled(din),
        ),
        compiler_params=pltpu.CompilerParams(
            dimension_semantics=("parallel",),    # batch axis shardable across TCs
        ),
    )(*inputs)

    return out[:B]


def init_params(key, n_steps, input_size):
    ks = jax.random.split(key, 11)

    def linear(kw, kb, fan_in, fan_out):
        bound = 1.0 / jnp.sqrt(fan_in)
        # stored pre-transposed as (in, out) so the kernel does x @ W on the MXU;
        # weights bf16 (MXU operands), biases stay f32.
        w = jax.random.uniform(kw, (fan_in, fan_out), jnp.float32, -bound, bound)
        b = jax.random.uniform(kb, (1, fan_out), jnp.float32, -bound, bound)
        return w.astype(jnp.bfloat16), b

    w1, b1 = linear(ks[0], ks[1], input_size, H)
    w2, b2 = linear(ks[2], ks[3], H, H)
    w3, b3 = linear(ks[4], ks[5], H, H)
    w4, b4 = linear(ks[6], ks[7], H, input_size)

    # nn.Embedding.weight.data.uniform_() -> U[0, 1).  Three tables concatenated so one
    # gather fetches all three gammas.  Master copy kept in f32 for accuracy.
    e1 = jax.random.uniform(ks[8], (n_steps, H), jnp.float32)
    e2 = jax.random.uniform(ks[9], (n_steps, H), jnp.float32)
    e3 = jax.random.uniform(ks[10], (n_steps, H), jnp.float32)
    embed_cat = jnp.concatenate([e1, e2, e3], axis=1)

    return dict(w1=w1, b1=b1, w2=w2, b2=b2, w3=w3, b3=b3, w4=w4, b4=b4,
                embed_cat=embed_cat)


def reference_forward(x, y, p, ew_dtype):
    """Pure-JAX reference mirroring the kernel's dtype choices (bf16 MXU operands /
    bf16-precision gammas / ew_dtype elementwise, f32 accumulation)."""
    cdt = jnp.bfloat16
    gam = p["embed_cat"][y].astype(cdt)
    g1, g2, g3 = gam[:, :H], gam[:, H:2 * H], gam[:, 2 * H:]

    def cond_layer(h, w, b, g):
        pre = jnp.dot(h.astype(cdt), w, preferred_element_type=jnp.float32) + b
        return _softplus(g.astype(ew_dtype) * pre.astype(ew_dtype))

    h = cond_layer(x, p["w1"], p["b1"], g1)
    h = cond_layer(h, p["w2"], p["b2"], g2)
    h = cond_layer(h, p["w3"], p["b3"], g3)
    return jnp.dot(h.astype(cdt), p["w4"], preferred_element_type=jnp.float32) + p["b4"]


if __name__ == "__main__":
    key = jax.random.PRNGKey(0)
    ew_dtype = _default_elementwise_dtype()
    tol = 4e-2 if ew_dtype == jnp.bfloat16 else 5e-3

    # Case 1: small step table -> in-kernel one-hot gather path, single grid step.
    n_steps, input_size, batch = 10, 8, 16
    kp, kx, ky, key = jax.random.split(key, 4)
    params = init_params(kp, n_steps, input_size)
    x = jax.random.normal(kx, (batch, input_size), jnp.float32)
    y = jax.random.randint(ky, (batch,), 0, n_steps, jnp.int32)
    out = jax.block_until_ready(conditional_model_forward(x, y, params))
    ref = reference_forward(x, y, params, ew_dtype)
    assert out.shape == (batch, input_size)
    assert jnp.allclose(out, ref, atol=tol, rtol=tol), "case 1 mismatch vs reference"

    # Case 2: large step table -> wrapper pre-gathers gammas; padded batch, 2-step grid.
    n_steps, input_size, batch = 300, 8, 600
    kp, kx, ky, key = jax.random.split(key, 4)
    params = init_params(kp, n_steps, input_size)
    x = jax.random.normal(kx, (batch, input_size), jnp.float32)
    y = jax.random.randint(ky, (batch,), 0, n_steps, jnp.int32)
    out = jax.block_until_ready(conditional_model_forward(x, y, params))
    ref = reference_forward(x, y, params, ew_dtype)
    assert out.shape == (batch, input_size)
    assert jnp.allclose(out, ref, atol=tol, rtol=tol), "case 2 mismatch vs reference"

    print("KERNEL_OK")
</pallas_src>

<mosaic_0001>
module attributes {stable_mosaic.version = 11 : i64} {
  func.func @_kernel_onehot_gather(%arg0: i32, %arg1: memref<16x8xf32, #tpu.memory_space<vmem>>, %arg2: memref<16x1xi32, #tpu.memory_space<vmem>>, %arg3: memref<10x384xbf16, #tpu.memory_space<vmem>>, %arg4: memref<8x128xbf16, #tpu.memory_space<vmem>>, %arg5: memref<1x128xf32, #tpu.memory_space<vmem>>, %arg6: memref<128x128xbf16, #tpu.memory_space<vmem>>, %arg7: memref<1x128xf32, #tpu.memory_space<vmem>>, %arg8: memref<128x128xbf16, #tpu.memory_space<vmem>>, %arg9: memref<1x128xf32, #tpu.memory_space<vmem>>, %arg10: memref<128x8xbf16, #tpu.memory_space<vmem>>, %arg11: memref<1x8xf32, #tpu.memory_space<vmem>>, %arg12: memref<16x8xf32, #tpu.memory_space<vmem>>) attributes {dimension_semantics = [#tpu.dimension_semantics<parallel>], iteration_bounds = array<i64: 1>, scalar_prefetch = 0 : i64, scratch_operands = 0 : i64, tpu.core_type = #tpu.core_type<tc>, window_params = [{transform_indices = @transform_0, window_bounds = array<i64: 16, 8>}, {transform_indices = @transform_1, window_bounds = array<i64: 16, 1>}, {pipeline_mode = #tpu.pipeline_mode<synchronous>, transform_indices = @transform_2, window_bounds = array<i64: 10, 384>}, {pipeline_mode = #tpu.pipeline_mode<synchronous>, transform_indices = @transform_3, window_bounds = array<i64: 8, 128>}, {pipeline_mode = #tpu.pipeline_mode<synchronous>, transform_indices = @transform_4, window_bounds = array<i64: 1, 128>}, {pipeline_mode = #tpu.pipeline_mode<synchronous>, transform_indices = @transform_5, window_bounds = array<i64: 128, 128>}, {pipeline_mode = #tpu.pipeline_mode<synchronous>, transform_indices = @transform_6, window_bounds = array<i64: 1, 128>}, {pipeline_mode = #tpu.pipeline_mode<synchronous>, transform_indices = @transform_7, window_bounds = array<i64: 128, 128>}, {pipeline_mode = #tpu.pipeline_mode<synchronous>, transform_indices = @transform_8, window_bounds = array<i64: 1, 128>}, {pipeline_mode = #tpu.pipeline_mode<synchronous>, transform_indices = @transform_9, window_bounds = array<i64: 128, 8>}, {pipeline_mode = #tpu.pipeline_mode<synchronous>, transform_indices = @transform_10, window_bounds = array<i64: 1, 8>}, {transform_indices = @transform_11, window_bounds = array<i64: 16, 8>}]} {
    %0 = tpu.iota {dimensions = array<i32: 1>} : vector<16x10xi32>
    %c0 = arith.constant 0 : index
    %c0_0 = arith.constant 0 : index
    %1 = vector.load %arg2[%c0, %c0_0] : memref<16x1xi32, #tpu.memory_space<vmem>>, vector<16x1xi32>
    %2 = vector.broadcast %1 : vector<16x1xi32> to vector<16x10xi32>
    %3 = arith.cmpi eq, %2, %0 : vector<16x10xi32>
    %4 = arith.extui %3 : vector<16x10xi1> to vector<16x10xi32>
    %5 = arith.sitofp %4 : vector<16x10xi32> to vector<16x10xf32>
    %6 = arith.truncf %5 : vector<16x10xf32> to vector<16x10xbf16>
    %c0_1 = arith.constant 0 : index
    %c0_2 = arith.constant 0 : index
    %7 = vector.load %arg3[%c0_1, %c0_2] : memref<10x384xbf16, #tpu.memory_space<vmem>>, vector<10x384xbf16>
    %cst = arith.constant dense<0.000000e+00> : vector<16x384xf32>
    %8 = tpu.matmul %6, %7, %cst {dimension_numbers = #tpu.dot_dimension_numbers<[1], [0], [0], [1], [0, 0, 1, 1], [], []>} : vector<16x10xbf16>, vector<10x384xbf16>, vector<16x384xf32> -> vector<16x384xf32>
    %c0_3 = arith.constant 0 : index
    %c0_4 = arith.constant 0 : index
    %9 = vector.load %arg1[%c0_3, %c0_4] : memref<16x8xf32, #tpu.memory_space<vmem>>, vector<16x8xf32>
    %10 = vector.extract_strided_slice %8 {offsets = [0, 0], sizes = [16, 128], strides = [1, 1]} : vector<16x384xf32> to vector<16x128xf32>
    %11 = vector.extract_strided_slice %8 {offsets = [0, 128], sizes = [16, 128], strides = [1, 1]} : vector<16x384xf32> to vector<16x128xf32>
    %12 = vector.extract_strided_slice %8 {offsets = [0, 256], sizes = [16, 128], strides = [1, 1]} : vector<16x384xf32> to vector<16x128xf32>
    %13 = arith.truncf %9 : vector<16x8xf32> to vector<16x8xbf16>
    %c0_5 = arith.constant 0 : index
    %c0_6 = arith.constant 0 : index
    %14 = vector.load %arg4[%c0_5, %c0_6] : memref<8x128xbf16, #tpu.memory_space<vmem>>, vector<8x128xbf16>
    %cst_7 = arith.constant dense<0.000000e+00> : vector<16x128xf32>
    %15 = tpu.matmul %13, %14, %cst_7 {dimension_numbers = #tpu.dot_dimension_numbers<[1], [0], [0], [1], [0, 0, 1, 1], [], []>} : vector<16x8xbf16>, vector<8x128xbf16>, vector<16x128xf32> -> vector<16x128xf32>
    %c0_8 = arith.constant 0 : index
    %c0_9 = arith.constant 0 : index
    %16 = vector.load %arg5[%c0_8, %c0_9] : memref<1x128xf32, #tpu.memory_space<vmem>>, vector<1x128xf32>
    %17 = vector.broadcast %16 : vector<1x128xf32> to vector<16x128xf32>
    %18 = arith.addf %15, %17 : vector<16x128xf32>
    %19 = arith.mulf %10, %18 : vector<16x128xf32>
    %cst_10 = arith.constant 0.000000e+00 : f32
    %20 = vector.broadcast %cst_10 : f32 to vector<16x128xf32>
    %21 = arith.maximumf %19, %20 : vector<16x128xf32>
    %22 = math.absf %19 : vector<16x128xf32>
    %cst_11 = arith.constant 0.000000e+00 : f32
    %23 = vector.broadcast %cst_11 : f32 to vector<16x128xf32>
    %24 = arith.subf %23, %22 : vector<16x128xf32>
    %25 = math.exp %24 : vector<16x128xf32>
    %26 = math.log1p %25 : vector<16x128xf32>
    %27 = arith.addf %21, %26 : vector<16x128xf32>
    %28 = arith.truncf %27 : vector<16x128xf32> to vector<16x128xbf16>
    %c0_12 = arith.constant 0 : index
    %c0_13 = arith.constant 0 : index
    %29 = vector.load %arg6[%c0_12, %c0_13] : memref<128x128xbf16, #tpu.memory_space<vmem>>, vector<128x128xbf16>
    %cst_14 = arith.constant dense<0.000000e+00> : vector<16x128xf32>
    %30 = tpu.matmul %28, %29, %cst_14 {dimension_numbers = #tpu.dot_dimension_numbers<[1], [0], [0], [1], [0, 0, 1, 1], [], []>} : vector<16x128xbf16>, vector<128x128xbf16>, vector<16x128xf32> -> vector<16x128xf32>
    %c0_15 = arith.constant 0 : index
    %c0_16 = arith.constant 0 : index
    %31 = vector.load %arg7[%c0_15, %c0_16] : memref<1x128xf32, #tpu.memory_space<vmem>>, vector<1x128xf32>
    %32 = vector.broadcast %31 : vector<1x128xf32> to vector<16x128xf32>
    %33 = arith.addf %30, %32 : vector<16x128xf32>
    %34 = arith.mulf %11, %33 : vector<16x128xf32>
    %cst_17 = arith.constant 0.000000e+00 : f32
    %35 = vector.broadcast %cst_17 : f32 to vector<16x128xf32>
    %36 = arith.maximumf %34, %35 : vector<16x128xf32>
    %37 = math.absf %34 : vector<16x128xf32>
    %cst_18 = arith.constant 0.000000e+00 : f32
    %38 = vector.broadcast %cst_18 : f32 to vector<16x128xf32>
    %39 = arith.subf %38, %37 : vector<16x128xf32>
    %40 = math.exp %39 : vector<16x128xf32>
    %41 = math.log1p %40 : vector<16x128xf32>
    %42 = arith.addf %36, %41 : vector<16x128xf32>
    %43 = arith.truncf %42 : vector<16x128xf32> to vector<16x128xbf16>
    %c0_19 = arith.constant 0 : index
    %c0_20 = arith.constant 0 : index
    %44 = vector.load %arg8[%c0_19, %c0_20] : memref<128x128xbf16, #tpu.memory_space<vmem>>, vector<128x128xbf16>
    %cst_21 = arith.constant dense<0.000000e+00> : vector<16x128xf32>
    %45 = tpu.matmul %43, %44, %cst_21 {dimension_numbers = #tpu.dot_dimension_numbers<[1], [0], [0], [1], [0, 0, 1, 1], [], []>} : vector<16x128xbf16>, vector<128x128xbf16>, vector<16x128xf32> -> vector<16x128xf32>
    %c0_22 = arith.constant 0 : index
    %c0_23 = arith.constant 0 : index
    %46 = vector.load %arg9[%c0_22, %c0_23] : memref<1x128xf32, #tpu.memory_space<vmem>>, vector<1x128xf32>
    %47 = vector.broadcast %46 : vector<1x128xf32> to vector<16x128xf32>
    %48 = arith.addf %45, %47 : vector<16x128xf32>
    %49 = arith.mulf %12, %48 : vector<16x128xf32>
    %cst_24 = arith.constant 0.000000e+00 : f32
    %50 = vector.broadcast %cst_24 : f32 to vector<16x128xf32>
    %51 = arith.maximumf %49, %50 : vector<16x128xf32>
    %52 = math.absf %49 : vector<16x128xf32>
    %cst_25 = arith.constant 0.000000e+00 : f32
    %53 = vector.broadcast %cst_25 : f32 to vector<16x128xf32>
    %54 = arith.subf %53, %52 : vector<16x128xf32>
    %55 = math.exp %54 : vector<16x128xf32>
    %56 = math.log1p %55 : vector<16x128xf32>
    %57 = arith.addf %51, %56 : vector<16x128xf32>
    %58 = arith.truncf %57 : vector<16x128xf32> to vector<16x128xbf16>
    %c0_26 = arith.constant 0 : index
    %c0_27 = arith.constant 0 : index
    %59 = vector.load %arg10[%c0_26, %c0_27] : memref<128x8xbf16, #tpu.memory_space<vmem>>, vector<128x8xbf16>
    %cst_28 = arith.constant dense<0.000000e+00> : vector<16x8xf32>
    %60 = tpu.matmul %58, %59, %cst_28 {dimension_numbers = #tpu.dot_dimension_numbers<[1], [0], [0], [1], [0, 0, 1, 1], [], []>} : vector<16x128xbf16>, vector<128x8xbf16>, vector<16x8xf32> -> vector<16x8xf32>
    %c0_29 = arith.constant 0 : index
    %c0_30 = arith.constant 0 : index
    %61 = vector.load %arg11[%c0_29, %c0_30] : memref<1x8xf32, #tpu.memory_space<vmem>>, vector<1x8xf32>
    %62 = vector.broadcast %61 : vector<1x8xf32> to vector<16x8xf32>
    %63 = arith.addf %60, %62 : vector<16x8xf32>
    %c0_31 = arith.constant 0 : index
    %c0_32 = arith.constant 0 : index
    %64 = vector.load %arg12[%c0_31, %c0_32] : memref<16x8xf32, #tpu.memory_space<vmem>>, vector<16x8xf32>
    tpu.vector_store %arg12[%c0_31, %c0_32], %63 {strides = array<i32>} : memref<16x8xf32, #tpu.memory_space<vmem>>, vector<16x8xf32>,
    return
  }
  func.func @transform_0(%arg0: i32) -> (i32, i32) {
    %c0_i32 = arith.constant 0 : i32
    %c0_i32_0 = arith.constant 0 : i32
    return %arg0, %c0_i32 : i32, i32
  }
  func.func @transform_1(%arg0: i32) -> (i32, i32) {
    %c0_i32 = arith.constant 0 : i32
    %c0_i32_0 = arith.constant 0 : i32
    return %arg0, %c0_i32 : i32, i32
  }
  func.func @transform_2(%arg0: i32) -> (i32, i32) {
    %c0_i32 = arith.constant 0 : i32
    %c0_i32_0 = arith.constant 0 : i32
    %c0_i32_1 = arith.constant 0 : i32
    return %c0_i32, %c0_i32_0 : i32, i32
  }
  func.func @transform_3(%arg0: i32) -> (i32, i32) {
    %c0_i32 = arith.constant 0 : i32
    %c0_i32_0 = arith.constant 0 : i32
    %c0_i32_1 = arith.constant 0 : i32
    return %c0_i32, %c0_i32_0 : i32, i32
  }
  func.func @transform_4(%arg0: i32) -> (i32, i32) {
    %c0_i32 = arith.constant 0 : i32
    %c0_i32_0 = arith.constant 0 : i32
    %c0_i32_1 = arith.constant 0 : i32
    return %c0_i32, %c0_i32_0 : i32, i32
  }
  func.func @transform_5(%arg0: i32) -> (i32, i32) {
    %c0_i32 = arith.constant 0 : i32
    %c0_i32_0 = arith.constant 0 : i32
    %c0_i32_1 = arith.constant 0 : i32
    return %c0_i32, %c0_i32_0 : i32, i32
  }
  func.func @transform_6(%arg0: i32) -> (i32, i32) {
    %c0_i32 = arith.constant 0 : i32
    %c0_i32_0 = arith.constant 0 : i32
    %c0_i32_1 = arith.constant 0 : i32
    return %c0_i32, %c0_i32_0 : i32, i32
  }
  func.func @transform_7(%arg0: i32) -> (i32, i32) {
    %c0_i32 = arith.constant 0 : i32
    %c0_i32_0 = arith.constant 0 : i32
    %c0_i32_1 = arith.constant 0 : i32
    return %c0_i32, %c0_i32_0 : i32, i32
  }
  func.func @transform_8(%arg0: i32) -> (i32, i32) {
    %c0_i32 = arith.constant 0 : i32
    %c0_i32_0 = arith.constant 0 : i32
    %c0_i32_1 = arith.constant 0 : i32
    return %c0_i32, %c0_i32_0 : i32, i32
  }
  func.func @transform_9(%arg0: i32) -> (i32, i32) {
    %c0_i32 = arith.constant 0 : i32
    %c0_i32_0 = arith.constant 0 : i32
    %c0_i32_1 = arith.constant 0 : i32
    return %c0_i32, %c0_i32_0 : i32, i32
  }
  func.func @transform_10(%arg0: i32) -> (i32, i32) {
    %c0_i32 = arith.constant 0 : i32
    %c0_i32_0 = arith.constant 0 : i32
    %c0_i32_1 = arith.constant 0 : i32
    return %c0_i32, %c0_i32_0 : i32, i32
  }
  func.func @transform_11(%arg0: i32) -> (i32, i32) {
    %c0_i32 = arith.constant 0 : i32
    %c0_i32_0 = arith.constant 0 : i32
    return %arg0, %c0_i32 : i32, i32
  }
}

</mosaic_0001>

<bundles_post_ra>
// kernel: tpu_custom_call.1
= control target key start
LH: loop header
LB: loop body
LE: loop exit
PB: predicated region body
PF: predicated region fallthrough
CT: control target
= control target key end

     0   :  { %16 = vsyncpa [#allocation3], 0  ;;  %s908_s17 = smov [#allocation2]   ;;  %s1123_s0 = inlined_call_operand.vmem [shape: f32[16,8], index: 0, kind: input, shape index: {}]   ;;  %s1124_s1 = inlined_call_operand.vmem [shape: s32[16,1], index: 1, kind: input, shape index: {}]   ;;  %s1125_s2 = inlined_call_operand.vmem [shape: bf16[10,384], index: 2, kind: input, shape index: {}]   ;;  %s1126_s3 = inlined_call_operand.vmem [shape: bf16[8,128], index: 3, kind: input, shape index: {}]   ;;  %s1127_s4 = inlined_call_operand.vmem [shape: f32[1,128], index: 4, kind: input, shape index: {}]   ;;  %s1128_s5 = inlined_call_operand.vmem [shape: bf16[128,128], index: 5, kind: input, shape index: {}]   ;;  %s1129_s6 = inlined_call_operand.vmem [shape: f32[1,128], index: 6, kind: input, shape index: {}]   ;;  %s1130_s7 = inlined_call_operand.hbm [shape: bf16[128,128], index: 7, kind: input, shape index: {}]   ;;  %s1131_s8 = inlined_call_operand.vmem [shape: f32[1,128], index: 8, kind: input, shape index: {}]   ;;  %s1132_s9 = inlined_call_operand.vmem [shape: bf16[128,8], index: 9, kind: input, shape index: {}]   ;;  %s1133_s10 = inlined_call_operand.vmem [shape: f32[1,8], index: 10, kind: input, shape index: {}]   ;;  %s1134_s11 = inlined_call_operand.vmem [shape: f32[16,8], index: 11, kind: output, shape index: {}]  }
   0x1   :  { %s36_s18 = sshll.u32 %s908_s17, 4  ;;  %s37_s18 = int_to_ptr.vmem [resolvable:$true] %s36_s18 }
   0x2   :  { %s894_s19 = scalar_lea.vmem %s37_s18, 1024  ;;  %p899_p1 = scmp.lt.s32.totalorder %s37_s18, %s37_s18 }
   0x3   :  { %p895_p0 = scmp.ne.s32.totalorder %s37_s18, %s894_s19  ;;  %p900_p2 = scmp.lt.s32.totalorder %s894_s19, %s894_s19 }
   0x5   :  { %p901_p3 = por %p900_p2, %p899_p1 }
   0x7   :  { %p902_p4 = pnand %p901_p3, %p895_p0 }
   0x9   :  { %905 = shalt.err (!%p902_p4)
}
   0xa   :  { %s909_s20 = smov 64   ;;  %s910_s21 = smov 4  }
   0xb   :  { %42 = dma.hbm_to_vmem [thread:$0]  %s1130_s7, 1024, %s37_s18, [#allocation3], %s909_s20, %s909_s20, %s910_s21  }
   0xc   :  { %906 = dma.done.wait [#allocation3], 1024  }
   0xd   :  { %907 = vsyncadd [#allocation3], 4294966272  ;;  %v911_v0 = vmov 0   ;;  %v912_v1 = vmov 0.0   ;;  %v55_v2 = vld [vmem:[%s1124_s1] sm:$0xff]  ;;  %vm91_vm0 = vcmask 1044480   ;;  %v53_v7 = vlaneseq }
   0xe   :  { %833 = vset.pattern.permute.xlu0 %v911_v0  ;;  %133 = vmatprep.mubr.bf16.mxu0 %v911_v0  ;;  %v834_v3 = vld [vmem:[%s1125_s2 + $0x4] ss:$12 sps:$4 sm:$0x1f]   ;;  %v56_v4 = vld [vmem:[%s1124_s1 + $0x8] sm:$0xff]  ;;  %vm913_vm1 = vmmov 0   ;;  %vm87_vm4 = vcmask 80896  }
   0xf   :  { %767 = vmatprep.subr.bf16.mxu1 %v912_v1  ;;  %58 = vperm.xlu0 %833, %v55_v2   ;;  %v836_v5 = vld [vmem:[%s1125_s2] ss:$12 sps:$4 sm:$0x1f]   ;;  %v54_v8 = vand.u32 127, %v53_v7  ;;  %vm200_vm5 = vcmask 1043456   ;;  %vm196_vm6 = vcmask 64512  }
  0x10   :  { %692 = vmatprep.subr.msk.bf16.mxu0 %vm91_vm0, %v834_v3  ;;  %v93_v6 = vsel %vm91_vm0, %v836_v5, 0  ;;  %783 = vmatprep.mubr.msk.bf16.mxu1 %vm913_vm1, %v912_v1  ;;  %v837_v10 = vld [vmem:[%s1125_s2 + $0x8] ss:$12 sps:$4 sm:$0x1f]   ;;  %v188_v16 = vld [vmem:[%s1126_s3] sm:$0xf] }
  0x11   :  { %116 = vmatpush1.bf16.msra.mxu0 %v93_v6  ;;  %v99_v15 = vsel %vm91_vm0, %v837_v10, 0  ;;  %v202_v17 = vsel %vm200_vm5, %v188_v16, 0  ;;  %v185_v18 = vld [vmem:[%s1123_s0] sm:$0xff]  ;;  %v186_v19 = vld [vmem:[%s1123_s0 + $0x8] sm:$0xff]  ;;  %v838_v21 = vld [vmem:[%s1128_s5 + $0x38] sm:$0xff]  }
  0x12   :  { %755 = vmatprep.subr.bf16.mxu0 %v912_v1  ;;  %v187_v20 = vpack.c.bf16 %v186_v19, %v185_v18  ;;  %768 = vmatpush3.bf16.msra.mxu1 %v838_v21  ;;  %v839_v22 = vld [vmem:[%s1128_s5 + $0x30] sm:$0xff]   ;;  %v840_v23 = vld [vmem:[%s1128_s5 + $0x28] sm:$0xff]   ;;  %v841_v24 = vld [vmem:[%s1128_s5 + $0x20] sm:$0xff]  }
  0x13   :  { %61 = vperm.xlu0 %833, %v56_v4   ;;  %769 = vmatprep.subr.bf16.mxu1 %v912_v1  ;;  %v842_v25 = vld [vmem:[%s1128_s5 + $0x18] sm:$0xff]   ;;  %v843_v26 = vld [vmem:[%s1128_s5 + $0x10] sm:$0xff]   ;;  %v844_v27 = vld [vmem:[%s1128_s5 + $0x8] sm:$0xff]  }
  0x14   :  { %v845_v28 = vld [vmem:[%s1128_s5] sm:$0xff]   ;;  %v850_v16 = vld [vmem:[#allocation2 + $0x18] sm:$0xff]   ;;  %v852_v18 = vld [vmem:[#allocation2 + $0x8] sm:$0xff]  }
  0x15   :  { %v695_v37 = vld [vmem:[%s1127_s4] ss:$0 sm:$0xff] }
  0x16   :  { %770 = vmatpush3.bf16.msra.mxu1 %v839_v22  ;;  %v853_v19 = vld [vmem:[#allocation2] sm:$0xff]  }
  0x17   :  { %771 = vmatprep.subr.bf16.mxu1 %v912_v1 }
  0x1a   :  { %772 = vmatpush3.bf16.msra.mxu1 %v840_v23 }
  0x1b   :  { %773 = vmatprep.subr.bf16.mxu1 %v912_v1 }
  0x1e   :  { %774 = vmatpush3.bf16.msra.mxu1 %v841_v24 }
  0x1f   :  { %775 = vmatprep.subr.bf16.mxu1 %v912_v1 }
  0x22   :  { %776 = vmatpush3.bf16.msra.mxu1 %v842_v25 }
  0x23   :  { %777 = vmatprep.subr.bf16.mxu1 %v912_v1 }
  0x26   :  { %778 = vmatpush3.bf16.msra.mxu1 %v843_v26 }
  0x27   :  { %779 = vmatprep.subr.bf16.mxu1 %v912_v1 }
  0x2a   :  { %780 = vmatpush3.bf16.msra.mxu1 %v844_v27 }
  0x2b   :  { %781 = vmatprep.subr.bf16.mxu1 %v912_v1 }
  0x2e   :  { %782 = vmatpush3.bf16.msra.mxu1 %v845_v28 }
  0x2f   :  { %807 = vmatprep.subr.bf16.mxu1 %v912_v1 }
  0x8a   :  { %v59_v9 = vpop.permute.xlu0 %58 }
  0x8b   :  { %vm63_vm2 = vcmp.eq.s32.totalorder %v59_v9, %v54_v8 }
  0x8c   :  { %v687_v12 = vsel %vm63_vm2, 1.0, %v912_v1 }
  0x8e   :  { %v62_v11 = vpop.permute.xlu0 %61 }
  0x8f   :  { %vm64_vm3 = vcmp.eq.s32.totalorder %v62_v11, %v54_v8 }
  0x90   :  { %v688_v13 = vsel %vm64_vm3, 1.0, %v912_v1 }
  0x91   :  { %v69_v14 = vpack.c.bf16 %v688_v13, %v687_v12  ;;  %v846_v12 = vld [vmem:[#allocation2 + $0x38] sm:$0xff]   ;;  %v847_v13 = vld [vmem:[#allocation2 + $0x30] sm:$0xff]  }
  0x93   :  { %693 = vmatmul.mubr.msk.bf16.vlgmr.msra.gmra.mxu0 %vm87_vm4, %v69_v14 }
  0x94   :  { %756 = vmatpush3.bf16.msra.mxu0 %v99_v15  ;;  %757 = vmatprep.mubr.msk.bf16.mxu0 %vm913_vm1, %v912_v1  ;;  %v849_v15 = vld [vmem:[#allocation2 + $0x20] sm:$0xff]  }
  0x95   :  { %761 = vmatprep.subr.bf16.mxu0 %v912_v1 }
  0x9b   :  { %758 = vmatmul.mubr.msk.bf16.vlgmr.msra.gmra.mxu0 %vm87_vm4, %v69_v14  ;;  %v848_v14 = vld [vmem:[#allocation2 + $0x28] sm:$0xff]  }
  0x9c   :  { %762 = vmatpush3.bf16.msra.mxu0 %v202_v17  ;;  %763 = vmatprep.mubr.msk.bf16.mxu0 %vm913_vm1, %v912_v1  ;;  %v851_v17 = vld [vmem:[#allocation2 + $0x10] sm:$0xff]  }
  0x9d   :  { %787 = vmatprep.subr.bf16.mxu0 %v912_v1 }
  0xa3   :  { %764 = vmatmul.mubr.msk.bf16.vlgmr.msra.gmra.mxu0 %vm196_vm6, %v187_v20  ;;  %v697_v20 = vld [vmem:[%s1129_s6] ss:$0 sm:$0xff] }
  0xa4   :  { %803 = vmatprep.mubr.msk.bf16.mxu0 %vm913_vm1, %v912_v1  ;;  %788 = vmatpush3.bf16.msra.mxu0 %v846_v12 }
  0xa5   :  { %789 = vmatprep.subr.bf16.mxu0 %v912_v1 }
  0xa8   :  { %790 = vmatpush3.bf16.msra.mxu0 %v847_v13 }
  0xa9   :  { %791 = vmatprep.subr.bf16.mxu0 %v912_v1 }
  0xac   :  { %792 = vmatpush3.bf16.msra.mxu0 %v848_v14 }
  0xad   :  { %793 = vmatprep.subr.bf16.mxu0 %v912_v1 }
  0xb0   :  { %794 = vmatpush3.bf16.msra.mxu0 %v849_v15 }
  0xb1   :  { %795 = vmatprep.subr.bf16.mxu0 %v912_v1 }
  0xb4   :  { %796 = vmatpush3.bf16.msra.mxu0 %v850_v16 }
  0xb5   :  { %797 = vmatprep.subr.bf16.mxu0 %v912_v1 }
  0xb8   :  { %798 = vmatpush3.bf16.msra.mxu0 %v851_v17 }
  0xb9   :  { %799 = vmatprep.subr.bf16.mxu0 %v912_v1 }
  0xbc   :  { %800 = vmatpush3.bf16.msra.mxu0 %v852_v18 }
  0xbd   :  { %801 = vmatprep.subr.bf16.mxu0 %v912_v1 }
  0xc0   :  { %802 = vmatpush3.bf16.msra.mxu0 %v853_v19 }
 0x153   :  { %v135_v29 = vpop.f32.mrf.mxu0 }
 0x155   :  { %v1051_v30 = vpop.f32.mrf.mxu0 }
 0x157   :  { %v139_v31 = vpop.f32.mrf.mxu0 }
 0x159   :  { %v1053_v32 = vpop.f32.mrf.mxu0 }
 0x15b   :  { %v1055_v33 = vpop.f32.mrf.mxu0 }
 0x15d   :  { %v759_v34 = vpop.f32.mrf.mxu0 }
 0x15f   :  { %v1057_v35 = vpop.f32.mrf.mxu0 }
 0x161   :  { %v760_v36 = vpop.f32.mrf.mxu0 }
 0x163   :  { %v238_v38 = vpop.f32.mrf.mxu0 }
 0x164   :  { %v239_v39 = vadd.f32 %v695_v37, %v238_v38 }
 0x165   :  { %v765_v40 = vpop.f32.mrf.mxu0 }
 0x166   :  { %v245_v41 = vmul.f32 %v239_v39, %v135_v29 }
 0x167   :  { %v241_v42 = vpop.f32.mrf.mxu0 }
 0x168   :  { %v249_v43 = vand.u32 2147483647, %v245_v41  ;;  %v242_v44 = vadd.f32 %v695_v37, %v241_v42  ;;  %v247_v6 = vmax.f32 %v245_v41, 0.0 }
 0x169   :  { %v766_v45 = vpop.f32.mrf.mxu0 }
 0x16a   :  { %v251_v46 = vsub.f32 0.0, %v249_v43  ;;  %v246_v47 = vmul.f32 %v242_v44, %v139_v31 }
 0x16c   :  { %v253_v48 = vmul.f32 1.442695, %v251_v46  ;;  %v250_v49 = vand.u32 2147483647, %v246_v47  ;;  %v248_v7 = vmax.f32 %v246_v47, 0.0 }
 0x16e   :  { %862 = vpow2.f32 %v253_v48  ;;  %v252_v50 = vsub.f32 0.0, %v250_v49 }
 0x170   :  { %v255_v51 = vmul.f32 1.442695, %v252_v50 }
 0x172   :  { %864 = vpow2.f32 %v255_v51 }
 0x17b   :  { %v863_v52 = vpop.eup %862 }
 0x17c   :  { %v257_v53 = vadd.f32 1.0, %v863_v52  ;;  %v260_v56 = vmul.f32 -0.5, %v863_v52  ;;  %v263_v60 = vand.u32 2147483647, %v863_v52 }
 0x17e   :  { %866 = vlog2.f32 %v257_v53  ;;  %v261_v58 = vadd.f32 1.0, %v260_v56  ;;  %vm264_vm7 = vcmp.lt.f32.partialorder %v263_v60, 0.0004427343  ;;  %v854_v60 = vld [vmem:[%s1132_s9 + $0x38] sm:$0xff]  }
 0x17f   :  { %v865_v54 = vpop.eup %864 }
 0x180   :  { %v266_v55 = vadd.f32 1.0, %v865_v54  ;;  %v269_v57 = vmul.f32 -0.5, %v865_v54  ;;  %v272_v63 = vand.u32 2147483647, %v865_v54  ;;  %v262_v0 = vmul.f32 %v863_v52, %v261_v58 }
 0x182   :  { %868 = vlog2.f32 %v266_v55  ;;  %v270_v62 = vadd.f32 1.0, %v269_v57  ;;  %vm273_vm8 = vcmp.lt.f32.partialorder %v272_v63, 0.0004427343  ;;  %v857_v63 = vld [vmem:[%s1132_s9 + $0x20] sm:$0xff]  }
 0x184   :  { %v271_v5 = vmul.f32 %v865_v54, %v270_v62  ;;  %v856_v62 = vld [vmem:[%s1132_s9 + $0x28] sm:$0xff]  }
 0x18b   :  { %v867_v59 = vpop.eup %866 }
 0x18c   :  { %v259_v61 = vmul.f32 0.6931472, %v867_v59 }
 0x18e   :  { %v265_v3 = vsel %vm264_vm7, %v262_v0, %v259_v61  ;;  %v855_v61 = vld [vmem:[%s1132_s9 + $0x30] sm:$0xff]   ;;  %v858_v0 = vld [vmem:[%s1132_s9 + $0x18] sm:$0xff]  }
 0x18f   :  { %v869_v2 = vpop.eup %868  ;;  %v275_v9 = vadd.f32 %v265_v3, %v247_v6  ;;  %v860_v3 = vld [vmem:[%s1132_s9 + $0x8] sm:$0xff]  }
 0x190   :  { %v268_v4 = vmul.f32 0.6931472, %v869_v2  ;;  %v859_v2 = vld [vmem:[%s1132_s9 + $0x10] sm:$0xff]  }
 0x192   :  { %v274_v8 = vsel %vm273_vm8, %v271_v5, %v268_v4  ;;  %v861_v4 = vld [vmem:[%s1132_s9] sm:$0xff]  }
 0x193   :  { %v276_v10 = vadd.f32 %v274_v8, %v248_v7  ;;  %v706_v5 = vld [vmem:[%s1131_s8] ss:$0 sm:$0xff] }
 0x195   :  { %v277_v11 = vpack.c.bf16 %v276_v10, %v275_v9 }
 0x197   :  { %784 = vmatmul.mubr.bf16.vlgmr.msra.gmra.mxu1 %v277_v11 }
 0x198   :  { %823 = vmatprep.mubr.msk.bf16.mxu1 %vm913_vm1, %v912_v1  ;;  %808 = vmatpush3.bf16.msra.mxu1 %v854_v60 }
 0x199   :  { %809 = vmatprep.subr.bf16.mxu1 %v912_v1 }
 0x19c   :  { %810 = vmatpush3.bf16.msra.mxu1 %v855_v61 }
 0x19d   :  { %811 = vmatprep.subr.bf16.mxu1 %v912_v1 }
 0x1a0   :  { %812 = vmatpush3.bf16.msra.mxu1 %v856_v62 }
 0x1a1   :  { %813 = vmatprep.subr.bf16.mxu1 %v912_v1 }
 0x1a4   :  { %814 = vmatpush3.bf16.msra.mxu1 %v857_v63 }
 0x1a5   :  { %815 = vmatprep.subr.bf16.mxu1 %v912_v1 }
 0x1a8   :  { %816 = vmatpush3.bf16.msra.mxu1 %v858_v0 }
 0x1a9   :  { %817 = vmatprep.subr.bf16.mxu1 %v912_v1 }
 0x1ac   :  { %818 = vmatpush3.bf16.msra.mxu1 %v859_v2 }
 0x1ad   :  { %819 = vmatprep.subr.bf16.mxu1 %v912_v1 }
 0x1b0   :  { %820 = vmatpush3.bf16.msra.mxu1 %v860_v3 }
 0x1b1   :  { %821 = vmatprep.subr.bf16.mxu1 %v912_v1 }
 0x1b4   :  { %822 = vmatpush3.bf16.msra.mxu1 %v861_v4 }
 0x257   :  { %v383_v21 = vpop.f32.mrf.mxu1 }
 0x258   :  { %v384_v22 = vadd.f32 %v697_v20, %v383_v21 }
 0x259   :  { %v785_v23 = vpop.f32.mrf.mxu1 }
 0x25a   :  { %v390_v24 = vmul.f32 %v384_v22, %v1051_v30 }
 0x25b   :  { %v386_v25 = vpop.f32.mrf.mxu1 }
 0x25c   :  { %v394_v26 = vand.u32 2147483647, %v390_v24  ;;  %v387_v27 = vadd.f32 %v697_v20, %v386_v25  ;;  %v392_v54 = vmax.f32 %v390_v24, 0.0 }
 0x25d   :  { %v786_v28 = vpop.f32.mrf.mxu1 }
 0x25e   :  { %v396_v29 = vsub.f32 0.0, %v394_v26  ;;  %v391_v31 = vmul.f32 %v387_v27, %v1053_v32 }
 0x260   :  { %v398_v34 = vmul.f32 1.442695, %v396_v29  ;;  %v395_v36 = vand.u32 2147483647, %v391_v31  ;;  %v393_v55 = vmax.f32 %v391_v31, 0.0 }
 0x262   :  { %870 = vpow2.f32 %v398_v34  ;;  %v397_v37 = vsub.f32 0.0, %v395_v36 }
 0x264   :  { %v400_v38 = vmul.f32 1.442695, %v397_v37 }
 0x266   :  { %872 = vpow2.f32 %v400_v38 }
 0x26f   :  { %v871_v39 = vpop.eup %870 }
 0x270   :  { %v402_v40 = vadd.f32 1.0, %v871_v39  ;;  %v405_v30 = vmul.f32 -0.5, %v871_v39  ;;  %v408_v46 = vand.u32 2147483647, %v871_v39 }
 0x272   :  { %874 = vlog2.f32 %v402_v40  ;;  %v406_v44 = vadd.f32 1.0, %v405_v30  ;;  %vm409_vm9 = vcmp.lt.f32.partialorder %v408_v46, 0.0004427343 }
 0x273   :  { %v873_v41 = vpop.eup %872 }
 0x274   :  { %v411_v42 = vadd.f32 1.0, %v873_v41  ;;  %v414_v43 = vmul.f32 -0.5, %v873_v41  ;;  %v417_v32 = vand.u32 2147483647, %v873_v41  ;;  %v407_v49 = vmul.f32 %v871_v39, %v406_v44 }
 0x276   :  { %876 = vlog2.f32 %v411_v42  ;;  %v415_v48 = vadd.f32 1.0, %v414_v43  ;;  %vm418_vm10 = vcmp.lt.f32.partialorder %v417_v32, 0.0004427343  ;;  %v715_v43 = vld [vmem:[%s1133_s10] ss:$0 sm:$0xff] }
 0x278   :  { %v416_v53 = vmul.f32 %v873_v41, %v415_v48 }
 0x27f   :  { %v875_v45 = vpop.eup %874 }
 0x280   :  { %v404_v47 = vmul.f32 0.6931472, %v875_v45 }
 0x282   :  { %v410_v51 = vsel %vm409_vm9, %v407_v49, %v404_v47 }
 0x283   :  { %v877_v50 = vpop.eup %876  ;;  %v420_v57 = vadd.f32 %v410_v51, %v392_v54 }
 0x284   :  { %v413_v52 = vmul.f32 0.6931472, %v877_v50 }
 0x286   :  { %v419_v56 = vsel %vm418_vm10, %v416_v53, %v413_v52 }
 0x287   :  { %v421_v58 = vadd.f32 %v419_v56, %v393_v55 }
 0x289   :  { %v422_v59 = vpack.c.bf16 %v421_v58, %v420_v57 }
 0x28b   :  { %804 = vmatmul.mubr.bf16.vlgmr.msra.gmra.mxu0 %v422_v59 }
 0x34b   :  { %v528_v6 = vpop.f32.mrf.mxu0 }
 0x34c   :  { %v529_v7 = vadd.f32 %v706_v5, %v528_v6 }
 0x34d   :  { %v805_v8 = vpop.f32.mrf.mxu0 }
 0x34e   :  { %v535_v9 = vmul.f32 %v529_v7, %v1055_v33 }
 0x34f   :  { %v531_v10 = vpop.f32.mrf.mxu0 }
 0x350   :  { %v539_v11 = vand.u32 2147483647, %v535_v9  ;;  %v532_v12 = vadd.f32 %v706_v5, %v531_v10  ;;  %v537_v38 = vmax.f32 %v535_v9, 0.0 }
 0x351   :  { %v806_v13 = vpop.f32.mrf.mxu0 }
 0x352   :  { %v541_v14 = vsub.f32 0.0, %v539_v11  ;;  %v536_v1 = vmul.f32 %v532_v12, %v1057_v35 }
 0x354   :  { %v543_v15 = vmul.f32 1.442695, %v541_v14  ;;  %v540_v16 = vand.u32 2147483647, %v536_v1  ;;  %v538_v39 = vmax.f32 %v536_v1, 0.0 }
 0x356   :  { %878 = vpow2.f32 %v543_v15  ;;  %v542_v17 = vsub.f32 0.0, %v540_v16 }
 0x358   :  { %v545_v18 = vmul.f32 1.442695, %v542_v17 }
 0x35a   :  { %880 = vpow2.f32 %v545_v18 }
 0x363   :  { %v879_v19 = vpop.eup %878 }
 0x364   :  { %v547_v20 = vadd.f32 1.0, %v879_v19  ;;  %v550_v33 = vmul.f32 -0.5, %v879_v19  ;;  %v553_v26 = vand.u32 2147483647, %v879_v19 }
 0x366   :  { %882 = vlog2.f32 %v547_v20  ;;  %v551_v24 = vadd.f32 1.0, %v550_v33  ;;  %vm554_vm11 = vcmp.lt.f32.partialorder %v553_v26, 0.0004427343 }
 0x367   :  { %v881_v21 = vpop.eup %880 }
 0x368   :  { %v556_v22 = vadd.f32 1.0, %v881_v21  ;;  %v559_v23 = vmul.f32 -0.5, %v881_v21  ;;  %v562_v35 = vand.u32 2147483647, %v881_v21  ;;  %v552_v29 = vmul.f32 %v879_v19, %v551_v24 }
 0x36a   :  { %884 = vlog2.f32 %v556_v22  ;;  %v560_v28 = vadd.f32 1.0, %v559_v23  ;;  %vm563_vm12 = vcmp.lt.f32.partialorder %v562_v35, 0.0004427343 }
 0x36c   :  { %v561_v37 = vmul.f32 %v881_v21, %v560_v28 }
 0x373   :  { %v883_v25 = vpop.eup %882 }
 0x374   :  { %v549_v27 = vmul.f32 0.6931472, %v883_v25 }
 0x376   :  { %v555_v34 = vsel %vm554_vm11, %v552_v29, %v549_v27 }
 0x377   :  { %v885_v31 = vpop.eup %884  ;;  %v565_v41 = vadd.f32 %v555_v34, %v537_v38 }
 0x378   :  { %v558_v36 = vmul.f32 0.6931472, %v885_v31 }
 0x37a   :  { %v564_v40 = vsel %vm563_vm12, %v561_v37, %v558_v36 }
 0x37b   :  { %v566_v42 = vadd.f32 %v564_v40, %v538_v39 }
 0x37d   :  { %v567_v30 = vpack.c.bf16 %v566_v42, %v565_v41 }
 0x37f   :  { %824 = vmatmul.mubr.bf16.vlgmr.msra.gmra.mxu1 %v567_v30 }
 0x43f   :  { %v673_v44 = vpop.f32.mrf.mxu1 }
 0x440   :  { %v674_v45 = vadd.f32 %v715_v43, %v673_v44 }
 0x441   :  { %v825_v46 = vpop.f32.mrf.mxu1 }
 0x442   :  { %680 = vst.msk [vmem:[%s1134_s11] sm:$0xff] %vm196_vm6, %v674_v45 }
 0x443   :  { %v676_v47 = vpop.f32.mrf.mxu1 }
 0x444   :  { %v677_v48 = vadd.f32 %v715_v43, %v676_v47 }
 0x445   :  { %v826_v32 = vpop.f32.mrf.mxu1 }
 0x446   :  { %681 = vst.msk [vmem:[%s1134_s11 + $0x8] sm:$0xff] %vm196_vm6, %v677_v48 }
 0x447   :  { %686 = vsyncpa [#allocation3], 1 }

</bundles_post_ra>
